<compile_context>
chip_gen: v7x
topology: tpu7x:2x2x1
jax: 0.10.0
libtpu: 0.0.40
codegen_flags: <defaults>
</compile_context>

<pallas_src>
import functools

import jax
import jax.numpy as jnp
from jax.experimental import pallas as pl
from jax.experimental.pallas import tpu as pltpu


NEG_SLOPE = 0.01      # nn.LeakyReLU() default negative_slope
ANS_LANES = 8         # lanes for the narrow answer / per-sample-loss blocks


def _round_up(x, m):
    return ((x + m - 1) // m) * m


def bert_head_kernel(x_ref, w1_ref, b1_ref, w2_ref, b2_ref, ans_ref,
                     probs_ref, logs_ref, loss_ref, *,
                     n_answers, compute_dtype):
    # x arrives already cast to compute_dtype (bf16) by the wrapper.
    x = x_ref[...]

    # Linear 1: (TB, D_pad) @ (D_pad, H_pad) + (1, H_pad); f32 accumulate.
    h = jnp.dot(x, w1_ref[...], preferred_element_type=jnp.float32) + b1_ref[...]
    # LeakyReLU as a single VPU max (instead of cmp + select).
    h = jnp.maximum(h, NEG_SLOPE * h)

    # Linear 2: (TB, H_pad) @ (H_pad, A_pad) + (1, A_pad); f32 accumulate.
    # TODO(synk): if n_answers ever grows to vocab scale, tile this matmul and
    # the log-softmax over the answer axis (running max/sum) instead of
    # materializing (TB, A_pad) f32 temporaries at once (v7x VMEM budget).
    logits = jnp.dot(h.astype(compute_dtype), w2_ref[...],
                     preferred_element_type=jnp.float32) + b2_ref[...]

    # Column index, reused for the padding mask and the NLL one-hot.
    col = jax.lax.broadcasted_iota(jnp.int32, logits.shape, dimension=1)

    # Mask padded answer columns with a large FINITE sentinel (not -inf) so
    # they vanish from max/sum without inf-inf / 0*inf hazards.
    if n_answers < logits.shape[1]:
        logits = jnp.where(col < n_answers, logits, jnp.finfo(jnp.float32).min)

    # Numerically stable log_softmax over the answer axis; single EUP exp
    # pass, reciprocal on the (otherwise idle) EUP slot.
    m = jnp.max(logits, axis=1, keepdims=True)
    shifted = logits - m
    p = jnp.exp(shifted)                            # reused for probs
    denom = jnp.sum(p, axis=1, keepdims=True)
    inv = pl.reciprocal(denom, approx=True)
    logs = shifted - jnp.log(denom)

    probs_ref[...] = (p * inv).astype(probs_ref.dtype)   # == exp(logs)
    logs_ref[...] = logs.astype(logs_ref.dtype)

    # nll_loss(logs, answer, reduction='none'): losses[b] = -logs[b, ans[b]]
    ans = ans_ref[:, 0:1]                           # (TB, 1) int32
    one_hot = col == ans
    loss_row = -jnp.sum(jnp.where(one_hot, logs, 0.0), axis=1, keepdims=True)
    # Narrow (TB, 8) store: 32 B/sample (16x less traffic than a 128-lane
    # broadcast) and no in-kernel sublane->lane relayout; the masked store of
    # this tiny auxiliary tile is negligible next to the probs/logs streams.
    loss_ref[...] = jnp.broadcast_to(loss_row, loss_ref.shape)


def prepare_params(params, compute_dtype=jnp.bfloat16):
    """Pad + cast the MLP-head weights ONCE, outside the per-step hot path.

    Call this at init (or after each optimizer update), not per forward call,
    so per-call HBM traffic is only activations + outputs.
    """
    w1 = jnp.asarray(params["w1"])
    b1 = jnp.asarray(params["b1"]).reshape(1, -1)
    w2 = jnp.asarray(params["w2"])
    b2 = jnp.asarray(params["b2"]).reshape(1, -1)
    D, H = w1.shape
    A = w2.shape[1]
    D_pad, H_pad, A_pad = (_round_up(d, 128) for d in (D, H, A))

    def pad_to(a, shape, dtype):
        a = a.astype(dtype)
        if a.shape == shape:
            return a
        return jnp.zeros(shape, dtype).at[:a.shape[0], :a.shape[1]].set(a)

    return {
        "w1": pad_to(w1, (D_pad, H_pad), compute_dtype),
        "b1": pad_to(b1, (1, H_pad), jnp.float32),
        "w2": pad_to(w2, (H_pad, A_pad), compute_dtype),
        "b2": pad_to(b2, (1, A_pad), jnp.float32),
        "dims": (D, H, A),
        "compute_dtype": compute_dtype,
    }


def _pick_batch_tile(B):
    """Batch tile (MXU M dim): multiples of 128; 256 for big batches
    (v6e/v5e), 128 for mid-size batches so v7x's two TensorCores each get at
    least one grid step; round_up(B, 8) only for tiny batches."""
    B_r8 = _round_up(B, 8)
    if B_r8 >= 512:
        return 256
    if B_r8 >= 128:
        return 128
    return B_r8


def bert_head_forward(last_state, answers, prepared, output_dtype=jnp.float32):
    """Fused MLP head + log_softmax + per-sample NLL Pallas kernel.

    Returns (losses [B], probs [B, A], logs [B, A]).
    `prepared` comes from prepare_params() (weights already padded / cast).
    Set output_dtype=jnp.bfloat16 to halve probs/logs writeback (useful on
    v6e) if the consumer tolerates bf16 distributions.
    """
    D, H, A = prepared["dims"]
    compute_dtype = prepared["compute_dtype"]
    w1, b1, w2, b2 = prepared["w1"], prepared["b1"], prepared["w2"], prepared["b2"]
    D_pad, H_pad = w1.shape
    A_pad = w2.shape[1]

    B = last_state.shape[0]
    TB = _pick_batch_tile(B)
    B_pad = _round_up(B, TB)
    grid = (B_pad // TB,)

    # Activations: cast to bf16 (halves input DMA + double-buffer VMEM); skip
    # the pad/repack copy entirely when already aligned (e.g. D=768, B%TB==0).
    x = last_state.astype(compute_dtype)
    if x.shape != (B_pad, D_pad):
        x = jnp.zeros((B_pad, D_pad), compute_dtype).at[:B, :D].set(x)

    # Answer indices as a narrow 8-lane int32 block (32 B/sample read).
    ans = jnp.zeros((B_pad, ANS_LANES), jnp.int32).at[:B, :].set(
        jnp.broadcast_to(answers.astype(jnp.int32)[:, None], (B, ANS_LANES)))

    kernel = functools.partial(bert_head_kernel,
                               n_answers=A, compute_dtype=compute_dtype)
    cd = jnp.dtype(compute_dtype).itemsize
    ob = jnp.dtype(output_dtype).itemsize

    def run(single_buffer_weights):
        # Constant-index weights: single-buffered (their index_map never
        # changes, double-buffering only burns VMEM -> matters on v7x 64 MiB).
        wkw = ({"pipeline_mode": pl.Buffered(1)} if single_buffer_weights else {})
        w_bufs = 1 if single_buffer_weights else 2

        est = (w_bufs * ((D_pad * H_pad + H_pad * A_pad) * cd
                         + (H_pad + A_pad) * 4)       # resident w1,b1,w2,b2
               + 2 * (TB * D_pad * cd                 # x tile (double-buffered)
                      + 2 * TB * ANS_LANES * 4        # ans + loss tiles
                      + 2 * TB * A_pad * ob)          # probs + logs tiles
               + 4 * TB * A_pad * 4                   # f32 softmax temporaries
               + 2 * TB * H_pad * 4                   # hidden activations
               + (4 << 20))                           # compiler scratch headroom
        # Cap at 48 MiB: leaves headroom on v7x's 64 MiB physical VMEM.
        vmem_limit = int(min(max(est, 16 << 20), 48 << 20))

        return pl.pallas_call(
            kernel,
            grid=grid,
            in_specs=[
                pl.BlockSpec((TB, D_pad), lambda i: (i, 0)),            # x
                pl.BlockSpec((D_pad, H_pad), lambda i: (0, 0), **wkw),  # w1
                pl.BlockSpec((1, H_pad), lambda i: (0, 0), **wkw),      # b1
                pl.BlockSpec((H_pad, A_pad), lambda i: (0, 0), **wkw),  # w2
                pl.BlockSpec((1, A_pad), lambda i: (0, 0), **wkw),      # b2
                pl.BlockSpec((TB, ANS_LANES), lambda i: (i, 0)),        # answers
            ],
            out_specs=(
                pl.BlockSpec((TB, A_pad), lambda i: (i, 0)),            # probs
                pl.BlockSpec((TB, A_pad), lambda i: (i, 0)),            # log-probs
                pl.BlockSpec((TB, ANS_LANES), lambda i: (i, 0)),        # loss
            ),
            out_shape=(
                jax.ShapeDtypeStruct((B_pad, A_pad), output_dtype),
                jax.ShapeDtypeStruct((B_pad, A_pad), output_dtype),
                jax.ShapeDtypeStruct((B_pad, ANS_LANES), jnp.float32),
            ),
            compiler_params=pltpu.CompilerParams(
                dimension_semantics=("parallel",),
                vmem_limit_bytes=vmem_limit),
        )(x, w1, b1, w2, b2, ans)

    try:
        probs, logs, loss = run(single_buffer_weights=True)
    except Exception:
        # TODO(synk): pipeline_mode=pl.Buffered(1) rejected by this JAX build's
        # TPU lowering; fall back to default double-buffered weight blocks.
        probs, logs, loss = run(single_buffer_weights=False)

    # Rows B..B_pad are padding (zero activations, ans=0) -> sliced off here.
    return loss[:B, 0], probs[:B, :A], logs[:B, :A]


def init_params(key, bert_dim, hidden_dim, n_answers):
    """Deterministic kaiming_normal-style init (matches module.init())."""
    k1, k2, k3, k4 = jax.random.split(key, 4)
    w1 = jax.random.normal(k1, (bert_dim, hidden_dim), jnp.float32) * \
        jnp.sqrt(2.0 / bert_dim)
    b1 = jax.random.normal(k2, (1, hidden_dim), jnp.float32) * 0.02
    w2 = jax.random.normal(k3, (hidden_dim, n_answers), jnp.float32) * \
        jnp.sqrt(2.0 / hidden_dim)
    b2 = jax.random.normal(k4, (1, n_answers), jnp.float32) * 0.02
    return {"w1": w1, "b1": b1, "w2": w2, "b2": b2}


def reference_forward(last_state, answers, params, compute_dtype=jnp.bfloat16):
    """Pure-JAX reference with the same bf16-matmul / f32-accumulate recipe."""
    x = last_state.astype(compute_dtype)
    w1 = params["w1"].astype(compute_dtype)
    w2 = params["w2"].astype(compute_dtype)
    h = jnp.dot(x, w1, preferred_element_type=jnp.float32) \
        + params["b1"].astype(jnp.float32)
    h = jnp.maximum(h, NEG_SLOPE * h)
    logits = jnp.dot(h.astype(compute_dtype), w2,
                     preferred_element_type=jnp.float32) \
        + params["b2"].astype(jnp.float32)
    logs = jax.nn.log_softmax(logits, axis=1)
    probs = jnp.exp(logs)
    losses = -jnp.take_along_axis(logs, answers[:, None], axis=1)[:, 0]
    return losses, probs, logs


if __name__ == "__main__":
    # Small synthetic shapes consistent with the forward pass:
    # batch=2, bert_dim=32 (stand-in for 768), hidden_dim=16, n_answers=8.
    B, BERT_DIM, HIDDEN_DIM, N_ANSWERS = 2, 32, 16, 8

    key = jax.random.PRNGKey(0)
    k_state, k_ans, k_params = jax.random.split(key, 3)

    # Stand-in for the pooled output of the frozen BERT encoder.
    last_state = jax.random.normal(k_state, (B, BERT_DIM), jnp.float32)
    answer_encoded = jax.random.randint(k_ans, (B,), 0, N_ANSWERS, jnp.int32)
    params = init_params(k_params, BERT_DIM, HIDDEN_DIM, N_ANSWERS)

    # Pad / cast weights ONCE (outside the per-call hot path).
    prepared = prepare_params(params)

    losses, probs, logs = bert_head_forward(last_state, answer_encoded, prepared)
    jax.block_until_ready((losses, probs, logs))

    # Correctness check against a pure-JAX reference (same bf16 matmul recipe).
    ref_losses, ref_probs, ref_logs = reference_forward(
        last_state, answer_encoded, params)
    assert jnp.allclose(losses, ref_losses, atol=1e-3, rtol=1e-3)
    # probs uses the approximate EUP reciprocal -> slightly looser tolerance.
    assert jnp.allclose(probs, ref_probs, atol=5e-3, rtol=5e-3)
    assert jnp.allclose(logs, ref_logs, atol=1e-3, rtol=1e-3)

    print("KERNEL_OK")
</pallas_src>

<mosaic_0001>
module attributes {stable_mosaic.version = 11 : i64} {
  func.func @bert_head_kernel(%arg0: i32, %arg1: memref<8x128xbf16, #tpu.memory_space<vmem>>, %arg2: memref<128x128xbf16, #tpu.memory_space<vmem>>, %arg3: memref<1x128xf32, #tpu.memory_space<vmem>>, %arg4: memref<128x128xbf16, #tpu.memory_space<vmem>>, %arg5: memref<1x128xf32, #tpu.memory_space<vmem>>, %arg6: memref<8x8xi32, #tpu.memory_space<vmem>>, %arg7: memref<8x128xf32, #tpu.memory_space<vmem>>, %arg8: memref<8x128xf32, #tpu.memory_space<vmem>>, %arg9: memref<8x8xf32, #tpu.memory_space<vmem>>) attributes {dimension_semantics = [#tpu.dimension_semantics<parallel>], iteration_bounds = array<i64: 1>, scalar_prefetch = 0 : i64, scratch_operands = 0 : i64, tpu.core_type = #tpu.core_type<tc>, window_params = [{transform_indices = @transform_0, window_bounds = array<i64: 8, 128>}, {pipeline_mode = #tpu.pipeline_mode<synchronous>, transform_indices = @transform_1, window_bounds = array<i64: 128, 128>}, {pipeline_mode = #tpu.pipeline_mode<synchronous>, transform_indices = @transform_2, window_bounds = array<i64: 1, 128>}, {pipeline_mode = #tpu.pipeline_mode<synchronous>, transform_indices = @transform_3, window_bounds = array<i64: 128, 128>}, {pipeline_mode = #tpu.pipeline_mode<synchronous>, transform_indices = @transform_4, window_bounds = array<i64: 1, 128>}, {transform_indices = @transform_5, window_bounds = array<i64: 8, 8>}, {transform_indices = @transform_6, window_bounds = array<i64: 8, 128>}, {transform_indices = @transform_7, window_bounds = array<i64: 8, 128>}, {transform_indices = @transform_8, window_bounds = array<i64: 8, 8>}]} {
    %c0 = arith.constant 0 : index
    %c0_0 = arith.constant 0 : index
    %0 = vector.load %arg1[%c0, %c0_0] : memref<8x128xbf16, #tpu.memory_space<vmem>>, vector<8x128xbf16>
    %c0_1 = arith.constant 0 : index
    %c0_2 = arith.constant 0 : index
    %1 = vector.load %arg2[%c0_1, %c0_2] : memref<128x128xbf16, #tpu.memory_space<vmem>>, vector<128x128xbf16>
    %cst = arith.constant dense<0.000000e+00> : vector<8x128xf32>
    %2 = tpu.matmul %0, %1, %cst {dimension_numbers = #tpu.dot_dimension_numbers<[1], [0], [0], [1], [0, 0, 1, 1], [], []>} : vector<8x128xbf16>, vector<128x128xbf16>, vector<8x128xf32> -> vector<8x128xf32>
    %c0_3 = arith.constant 0 : index
    %c0_4 = arith.constant 0 : index
    %3 = vector.load %arg3[%c0_3, %c0_4] : memref<1x128xf32, #tpu.memory_space<vmem>>, vector<1x128xf32>
    %4 = vector.broadcast %3 : vector<1x128xf32> to vector<8x128xf32>
    %5 = arith.addf %2, %4 : vector<8x128xf32>
    %cst_5 = arith.constant 0.00999999977 : f32
    %6 = vector.broadcast %cst_5 : f32 to vector<8x128xf32>
    %7 = arith.mulf %6, %5 : vector<8x128xf32>
    %8 = arith.maximumf %5, %7 : vector<8x128xf32>
    %9 = arith.truncf %8 : vector<8x128xf32> to vector<8x128xbf16>
    %c0_6 = arith.constant 0 : index
    %c0_7 = arith.constant 0 : index
    %10 = vector.load %arg4[%c0_6, %c0_7] : memref<128x128xbf16, #tpu.memory_space<vmem>>, vector<128x128xbf16>
    %cst_8 = arith.constant dense<0.000000e+00> : vector<8x128xf32>
    %11 = tpu.matmul %9, %10, %cst_8 {dimension_numbers = #tpu.dot_dimension_numbers<[1], [0], [0], [1], [0, 0, 1, 1], [], []>} : vector<8x128xbf16>, vector<128x128xbf16>, vector<8x128xf32> -> vector<8x128xf32>
    %c0_9 = arith.constant 0 : index
    %c0_10 = arith.constant 0 : index
    %12 = vector.load %arg5[%c0_9, %c0_10] : memref<1x128xf32, #tpu.memory_space<vmem>>, vector<1x128xf32>
    %13 = vector.broadcast %12 : vector<1x128xf32> to vector<8x128xf32>
    %14 = arith.addf %11, %13 : vector<8x128xf32>
    %15 = tpu.iota {dimensions = array<i32: 1>} : vector<8x128xi32>
    %c8_i32 = arith.constant 8 : i32
    %16 = vector.broadcast %c8_i32 : i32 to vector<8x128xi32>
    %17 = arith.cmpi slt, %15, %16 : vector<8x128xi32>
    %cst_11 = arith.constant -3.40282347E+38 : f32
    %18 = vector.broadcast %cst_11 : f32 to vector<8x128xf32>
    %19 = arith.select %17, %14, %18 : vector<8x128xi1>, vector<8x128xf32>
    %cst_12 = arith.constant dense<0xFF800000> : vector<8xf32>
    %20 = vector.multi_reduction <maximumf>, %19, %cst_12 [1] : vector<8x128xf32> to vector<8xf32>
    %21 = vector.shape_cast %20 : vector<8xf32> to vector<8x1xf32>
    %22 = vector.broadcast %21 : vector<8x1xf32> to vector<8x128xf32>
    %23 = arith.subf %19, %22 : vector<8x128xf32>
    %24 = math.exp %23 : vector<8x128xf32>
    %cst_13 = arith.constant dense<0.000000e+00> : vector<8xf32>
    %25 = vector.multi_reduction <add>, %24, %cst_13 [1] : vector<8x128xf32> to vector<8xf32>
    %26 = vector.shape_cast %25 : vector<8xf32> to vector<8x1xf32>
    %27 = tpu.reciprocal %26 {approx = true} : vector<8x1xf32> -> vector<8x1xf32>
    %28 = math.log %26 : vector<8x1xf32>
    %29 = vector.broadcast %28 : vector<8x1xf32> to vector<8x128xf32>
    %30 = arith.subf %23, %29 : vector<8x128xf32>
    %31 = vector.broadcast %27 : vector<8x1xf32> to vector<8x128xf32>
    %32 = arith.mulf %24, %31 : vector<8x128xf32>
    %c0_14 = arith.constant 0 : index
    %c0_15 = arith.constant 0 : index
    %33 = vector.load %arg7[%c0_14, %c0_15] : memref<8x128xf32, #tpu.memory_space<vmem>>, vector<8x128xf32>
    tpu.vector_store %arg7[%c0_14, %c0_15], %32 {strides = array<i32>} : memref<8x128xf32, #tpu.memory_space<vmem>>, vector<8x128xf32>,
    %c0_16 = arith.constant 0 : index
    %c0_17 = arith.constant 0 : index
    %34 = vector.load %arg8[%c0_16, %c0_17] : memref<8x128xf32, #tpu.memory_space<vmem>>, vector<8x128xf32>
    tpu.vector_store %arg8[%c0_16, %c0_17], %30 {strides = array<i32>} : memref<8x128xf32, #tpu.memory_space<vmem>>, vector<8x128xf32>,
    %c0_18 = arith.constant 0 : index
    %c0_19 = arith.constant 0 : index
    %35 = vector.load %arg6[%c0_18, %c0_19] : memref<8x8xi32, #tpu.memory_space<vmem>>, vector<8x1xi32>
    %36 = vector.broadcast %35 : vector<8x1xi32> to vector<8x128xi32>
    %37 = arith.cmpi eq, %15, %36 : vector<8x128xi32>
    %cst_20 = arith.constant 0.000000e+00 : f32
    %38 = vector.broadcast %cst_20 : f32 to vector<8x128xf32>
    %39 = arith.select %37, %30, %38 : vector<8x128xi1>, vector<8x128xf32>
    %cst_21 = arith.constant dense<0.000000e+00> : vector<8xf32>
    %40 = vector.multi_reduction <add>, %39, %cst_21 [1] : vector<8x128xf32> to vector<8xf32>
    %41 = vector.shape_cast %40 : vector<8xf32> to vector<8x1xf32>
    %cst_22 = arith.constant 0.000000e+00 : f32
    %42 = vector.broadcast %cst_22 : f32 to vector<8x1xf32>
    %43 = arith.subf %42, %41 : vector<8x1xf32>
    %44 = vector.shape_cast %43 : vector<8x1xf32> to vector<8x1xf32>
    %45 = vector.broadcast %44 : vector<8x1xf32> to vector<8x8xf32>
    %c0_23 = arith.constant 0 : index
    %c0_24 = arith.constant 0 : index
    %46 = vector.load %arg9[%c0_23, %c0_24] : memref<8x8xf32, #tpu.memory_space<vmem>>, vector<8x8xf32>
    tpu.vector_store %arg9[%c0_23, %c0_24], %45 {strides = array<i32>} : memref<8x8xf32, #tpu.memory_space<vmem>>, vector<8x8xf32>,
    return
  }
  func.func @transform_0(%arg0: i32) -> (i32, i32) {
    %c0_i32 = arith.constant 0 : i32
    %c0_i32_0 = arith.constant 0 : i32
    return %arg0, %c0_i32 : i32, i32
  }
  func.func @transform_1(%arg0: i32) -> (i32, i32) {
    %c0_i32 = arith.constant 0 : i32
    %c0_i32_0 = arith.constant 0 : i32
    %c0_i32_1 = arith.constant 0 : i32
    return %c0_i32, %c0_i32_0 : i32, i32
  }
  func.func @transform_2(%arg0: i32) -> (i32, i32) {
    %c0_i32 = arith.constant 0 : i32
    %c0_i32_0 = arith.constant 0 : i32
    %c0_i32_1 = arith.constant 0 : i32
    return %c0_i32, %c0_i32_0 : i32, i32
  }
  func.func @transform_3(%arg0: i32) -> (i32, i32) {
    %c0_i32 = arith.constant 0 : i32
    %c0_i32_0 = arith.constant 0 : i32
    %c0_i32_1 = arith.constant 0 : i32
    return %c0_i32, %c0_i32_0 : i32, i32
  }
  func.func @transform_4(%arg0: i32) -> (i32, i32) {
    %c0_i32 = arith.constant 0 : i32
    %c0_i32_0 = arith.constant 0 : i32
    %c0_i32_1 = arith.constant 0 : i32
    return %c0_i32, %c0_i32_0 : i32, i32
  }
  func.func @transform_5(%arg0: i32) -> (i32, i32) {
    %c0_i32 = arith.constant 0 : i32
    %c0_i32_0 = arith.constant 0 : i32
    return %arg0, %c0_i32 : i32, i32
  }
  func.func @transform_6(%arg0: i32) -> (i32, i32) {
    %c0_i32 = arith.constant 0 : i32
    %c0_i32_0 = arith.constant 0 : i32
    return %arg0, %c0_i32 : i32, i32
  }
  func.func @transform_7(%arg0: i32) -> (i32, i32) {
    %c0_i32 = arith.constant 0 : i32
    %c0_i32_0 = arith.constant 0 : i32
    return %arg0, %c0_i32 : i32, i32
  }
  func.func @transform_8(%arg0: i32) -> (i32, i32) {
    %c0_i32 = arith.constant 0 : i32
    %c0_i32_0 = arith.constant 0 : i32
    return %arg0, %c0_i32 : i32, i32
  }
}

module attributes {stable_mosaic.version = 11 : i64} {
  func.func @bert_head_kernel(%arg0: i32, %arg1: memref<8x128xbf16, #tpu.memory_space<vmem>>, %arg2: memref<128x128xbf16, #tpu.memory_space<vmem>>, %arg3: memref<1x128xf32, #tpu.memory_space<vmem>>, %arg4: memref<128x128xbf16, #tpu.memory_space<vmem>>, %arg5: memref<1x128xf32, #tpu.memory_space<vmem>>, %arg6: memref<8x8xi32, #tpu.memory_space<vmem>>, %arg7: memref<8x128xf32, #tpu.memory_space<vmem>>, %arg8: memref<8x128xf32, #tpu.memory_space<vmem>>, %arg9: memref<8x8xf32, #tpu.memory_space<vmem>>) attributes {dimension_semantics = [#tpu.dimension_semantics<parallel>], iteration_bounds = array<i64: 1>, scalar_prefetch = 0 : i64, scratch_operands = 0 : i64, tpu.core_type = #tpu.core_type<tc>, window_params = [{transform_indices = @transform_0, window_bounds = array<i64: 8, 128>}, {pipeline_mode = #tpu.pipeline_mode<synchronous>, transform_indices = @transform_1, window_bounds = array<i64: 128, 128>}, {pipeline_mode = #tpu.pipeline_mode<synchronous>, transform_indices = @transform_2, window_bounds = array<i64: 1, 128>}, {pipeline_mode = #tpu.pipeline_mode<synchronous>, transform_indices = @transform_3, window_bounds = array<i64: 128, 128>}, {pipeline_mode = #tpu.pipeline_mode<synchronous>, transform_indices = @transform_4, window_bounds = array<i64: 1, 128>}, {transform_indices = @transform_5, window_bounds = array<i64: 8, 8>}, {transform_indices = @transform_6, window_bounds = array<i64: 8, 128>}, {transform_indices = @transform_7, window_bounds = array<i64: 8, 128>}, {transform_indices = @transform_8, window_bounds = array<i64: 8, 8>}]} {
    %c0 = arith.constant 0 : index
    %c0_0 = arith.constant 0 : index
    %0 = vector.load %arg1[%c0, %c0_0] : memref<8x128xbf16, #tpu.memory_space<vmem>>, vector<8x128xbf16>
    %c0_1 = arith.constant 0 : index
    %c0_2 = arith.constant 0 : index
    %1 = vector.load %arg2[%c0_1, %c0_2] : memref<128x128xbf16, #tpu.memory_space<vmem>>, vector<128x128xbf16>
    %cst = arith.constant dense<0.000000e+00> : vector<8x128xf32>
    %2 = tpu.matmul %0, %1, %cst {dimension_numbers = #tpu.dot_dimension_numbers<[1], [0], [0], [1], [0, 0, 1, 1], [], []>} : vector<8x128xbf16>, vector<128x128xbf16>, vector<8x128xf32> -> vector<8x128xf32>
    %c0_3 = arith.constant 0 : index
    %c0_4 = arith.constant 0 : index
    %3 = vector.load %arg3[%c0_3, %c0_4] : memref<1x128xf32, #tpu.memory_space<vmem>>, vector<1x128xf32>
    %4 = vector.broadcast %3 : vector<1x128xf32> to vector<8x128xf32>
    %5 = arith.addf %2, %4 : vector<8x128xf32>
    %cst_5 = arith.constant 0.00999999977 : f32
    %6 = vector.broadcast %cst_5 : f32 to vector<8x128xf32>
    %7 = arith.mulf %6, %5 : vector<8x128xf32>
    %8 = arith.maximumf %5, %7 : vector<8x128xf32>
    %9 = arith.truncf %8 : vector<8x128xf32> to vector<8x128xbf16>
    %c0_6 = arith.constant 0 : index
    %c0_7 = arith.constant 0 : index
    %10 = vector.load %arg4[%c0_6, %c0_7] : memref<128x128xbf16, #tpu.memory_space<vmem>>, vector<128x128xbf16>
    %cst_8 = arith.constant dense<0.000000e+00> : vector<8x128xf32>
    %11 = tpu.matmul %9, %10, %cst_8 {dimension_numbers = #tpu.dot_dimension_numbers<[1], [0], [0], [1], [0, 0, 1, 1], [], []>} : vector<8x128xbf16>, vector<128x128xbf16>, vector<8x128xf32> -> vector<8x128xf32>
    %c0_9 = arith.constant 0 : index
    %c0_10 = arith.constant 0 : index
    %12 = vector.load %arg5[%c0_9, %c0_10] : memref<1x128xf32, #tpu.memory_space<vmem>>, vector<1x128xf32>
    %13 = vector.broadcast %12 : vector<1x128xf32> to vector<8x128xf32>
    %14 = arith.addf %11, %13 : vector<8x128xf32>
    %15 = tpu.iota {dimensions = array<i32: 1>} : vector<8x128xi32>
    %c8_i32 = arith.constant 8 : i32
    %16 = vector.broadcast %c8_i32 : i32 to vector<8x128xi32>
    %17 = arith.cmpi slt, %15, %16 : vector<8x128xi32>
    %cst_11 = arith.constant -3.40282347E+38 : f32
    %18 = vector.broadcast %cst_11 : f32 to vector<8x128xf32>
    %19 = arith.select %17, %14, %18 : vector<8x128xi1>, vector<8x128xf32>
    %cst_12 = arith.constant dense<0xFF800000> : vector<8xf32>
    %20 = vector.multi_reduction <maximumf>, %19, %cst_12 [1] : vector<8x128xf32> to vector<8xf32>
    %21 = vector.shape_cast %20 : vector<8xf32> to vector<8x1xf32>
    %22 = vector.broadcast %21 : vector<8x1xf32> to vector<8x128xf32>
    %23 = arith.subf %19, %22 : vector<8x128xf32>
    %24 = math.exp %23 : vector<8x128xf32>
    %cst_13 = arith.constant dense<0.000000e+00> : vector<8xf32>
    %25 = vector.multi_reduction <add>, %24, %cst_13 [1] : vector<8x128xf32> to vector<8xf32>
    %26 = vector.shape_cast %25 : vector<8xf32> to vector<8x1xf32>
    %27 = tpu.reciprocal %26 {approx = true} : vector<8x1xf32> -> vector<8x1xf32>
    %28 = math.log %26 : vector<8x1xf32>
    %29 = vector.broadcast %28 : vector<8x1xf32> to vector<8x128xf32>
    %30 = arith.subf %23, %29 : vector<8x128xf32>
    %31 = vector.broadcast %27 : vector<8x1xf32> to vector<8x128xf32>
    %32 = arith.mulf %24, %31 : vector<8x128xf32>
    %c0_14 = arith.constant 0 : index
    %c0_15 = arith.constant 0 : index
    %33 = vector.load %arg7[%c0_14, %c0_15] : memref<8x128xf32, #tpu.memory_space<vmem>>, vector<8x128xf32>
    tpu.vector_store %arg7[%c0_14, %c0_15], %32 {strides = array<i32>} : memref<8x128xf32, #tpu.memory_space<vmem>>, vector<8x128xf32>,
    %c0_16 = arith.constant 0 : index
    %c0_17 = arith.constant 0 : index
    %34 = vector.load %arg8[%c0_16, %c0_17] : memref<8x128xf32, #tpu.memory_space<vmem>>, vector<8x128xf32>
    tpu.vector_store %arg8[%c0_16, %c0_17], %30 {strides = array<i32>} : memref<8x128xf32, #tpu.memory_space<vmem>>, vector<8x128xf32>,
    %c0_18 = arith.constant 0 : index
    %c0_19 = arith.constant 0 : index
    %35 = vector.load %arg6[%c0_18, %c0_19] : memref<8x8xi32, #tpu.memory_space<vmem>>, vector<8x1xi32>
    %36 = vector.broadcast %35 : vector<8x1xi32> to vector<8x128xi32>
    %37 = arith.cmpi eq, %15, %36 : vector<8x128xi32>
    %cst_20 = arith.constant 0.000000e+00 : f32
    %38 = vector.broadcast %cst_20 : f32 to vector<8x128xf32>
    %39 = arith.select %37, %30, %38 : vector<8x128xi1>, vector<8x128xf32>
    %cst_21 = arith.constant dense<0.000000e+00> : vector<8xf32>
    %40 = vector.multi_reduction <add>, %39, %cst_21 [1] : vector<8x128xf32> to vector<8xf32>
    %41 = vector.shape_cast %40 : vector<8xf32> to vector<8x1xf32>
    %cst_22 = arith.constant 0.000000e+00 : f32
    %42 = vector.broadcast %cst_22 : f32 to vector<8x1xf32>
    %43 = arith.subf %42, %41 : vector<8x1xf32>
    %44 = vector.shape_cast %43 : vector<8x1xf32> to vector<8x1xf32>
    %45 = vector.broadcast %44 : vector<8x1xf32> to vector<8x8xf32>
    %c0_23 = arith.constant 0 : index
    %c0_24 = arith.constant 0 : index
    %46 = vector.load %arg9[%c0_23, %c0_24] : memref<8x8xf32, #tpu.memory_space<vmem>>, vector<8x8xf32>
    tpu.vector_store %arg9[%c0_23, %c0_24], %45 {strides = array<i32>} : memref<8x8xf32, #tpu.memory_space<vmem>>, vector<8x8xf32>,
    return
  }
  func.func @transform_0(%arg0: i32) -> (i32, i32) {
    %c0_i32 = arith.constant 0 : i32
    %c0_i32_0 = arith.constant 0 : i32
    return %arg0, %c0_i32 : i32, i32
  }
  func.func @transform_1(%arg0: i32) -> (i32, i32) {
    %c0_i32 = arith.constant 0 : i32
    %c0_i32_0 = arith.constant 0 : i32
    %c0_i32_1 = arith.constant 0 : i32
    return %c0_i32, %c0_i32_0 : i32, i32
  }
  func.func @transform_2(%arg0: i32) -> (i32, i32) {
    %c0_i32 = arith.constant 0 : i32
    %c0_i32_0 = arith.constant 0 : i32
    %c0_i32_1 = arith.constant 0 : i32
    return %c0_i32, %c0_i32_0 : i32, i32
  }
  func.func @transform_3(%arg0: i32) -> (i32, i32) {
    %c0_i32 = arith.constant 0 : i32
    %c0_i32_0 = arith.constant 0 : i32
    %c0_i32_1 = arith.constant 0 : i32
    return %c0_i32, %c0_i32_0 : i32, i32
  }
  func.func @transform_4(%arg0: i32) -> (i32, i32) {
    %c0_i32 = arith.constant 0 : i32
    %c0_i32_0 = arith.constant 0 : i32
    %c0_i32_1 = arith.constant 0 : i32
    return %c0_i32, %c0_i32_0 : i32, i32
  }
  func.func @transform_5(%arg0: i32) -> (i32, i32) {
    %c0_i32 = arith.constant 0 : i32
    %c0_i32_0 = arith.constant 0 : i32
    return %arg0, %c0_i32 : i32, i32
  }
  func.func @transform_6(%arg0: i32) -> (i32, i32) {
    %c0_i32 = arith.constant 0 : i32
    %c0_i32_0 = arith.constant 0 : i32
    return %arg0, %c0_i32 : i32, i32
  }
  func.func @transform_7(%arg0: i32) -> (i32, i32) {
    %c0_i32 = arith.constant 0 : i32
    %c0_i32_0 = arith.constant 0 : i32
    return %arg0, %c0_i32 : i32, i32
  }
  func.func @transform_8(%arg0: i32) -> (i32, i32) {
    %c0_i32 = arith.constant 0 : i32
    %c0_i32_0 = arith.constant 0 : i32
    return %arg0, %c0_i32 : i32, i32
  }
}

</mosaic_0001>

<bundles_post_ra>
// kernel: tpu_custom_call.1
= control target key start
LH: loop header
LB: loop body
LE: loop exit
PB: predicated region body
PF: predicated region fallthrough
CT: control target
= control target key end

     0   :  { %14 = vsyncpa [#allocation3], 0  ;;  %s760_s0 = inlined_call_operand.hbm [shape: bf16[8,128], index: 0, kind: input, shape index: {}]   ;;  %s761_s1 = inlined_call_operand.hbm [shape: bf16[128,128], index: 1, kind: input, shape index: {}]   ;;  %s762_s2 = inlined_call_operand.vmem [shape: f32[1,128], index: 2, kind: input, shape index: {}]   ;;  %s763_s3 = inlined_call_operand.hbm [shape: bf16[128,128], index: 3, kind: input, shape index: {}]   ;;  %s764_s4 = inlined_call_operand.vmem [shape: f32[1,128], index: 4, kind: input, shape index: {}]   ;;  %s765_s5 = inlined_call_operand.vmem [shape: s32[8,8], index: 5, kind: input, shape index: {}]   ;;  %s766_s6 = inlined_call_operand.hbm [shape: f32[8,128], index: 6, kind: output, shape index: {0}]   ;;  %s767_s7 = inlined_call_operand.hbm [shape: f32[8,128], index: 7, kind: output, shape index: {1}]   ;;  %s768_s8 = inlined_call_operand.hbm [shape: f32[8,8], index: 8, kind: output, shape index: {2}]  }
   0x1   :  { %15 = vsyncpa [#allocation6], 0 }
   0x2   :  { %16 = vsyncpa [#allocation4], 0 }
   0x3   :  { %17 = vsyncpa [#allocation10], 0  ;;  %s617_s27 = smov [#allocation5]   ;;  %s477_s9 = scalar_lea.hbm %s761_s1, 1024 }
   0x4   :  { %s33_s28 = sshll.u32 %s617_s27, 4  ;;  %p478_p0 = scmp.ne.s32.totalorder %s761_s1, %s477_s9  ;;  %s34_s28 = int_to_ptr.vmem [resolvable:$true] %s33_s28 }
   0x5   :  { %p481_p1 = scmp.lt.u32.totalorder %s477_s9, %s761_s1 }
   0x7   :  { %p483_p2 = pnand %p481_p1, %p478_p0 }
   0x9   :  { %486 = shalt.err (!%p483_p2)
}
   0xa   :  { %s487_s14 = scalar_lea.vmem %s34_s28, 1024  ;;  %p492_p4 = scmp.lt.s32.totalorder %s34_s28, %s34_s28 }
   0xb   :  { %p488_p3 = scmp.ne.s32.totalorder %s34_s28, %s487_s14  ;;  %p493_p5 = scmp.lt.s32.totalorder %s487_s14, %s487_s14 }
   0xd   :  { %p494_p6 = por %p493_p5, %p492_p4 }
   0xf   :  { %p495_p7 = pnand %p494_p6, %p488_p3 }
  0x11   :  { %498 = shalt.err (!%p495_p7)
}
  0x12   :  { %s618_s15 = smov 64   ;;  %s619_s16 = smov 4  }
  0x13   :  { %39 = dma.hbm_to_vmem [thread:$0]  %s761_s1, 1024, %s34_s28, [#allocation6], %s618_s15, %s618_s15, %s619_s16  }
  0x14   :  { %s620_s19 = smov [#allocation2]   ;;  %s621_s21 = smov [#allocation7]  }
  0x15   :  { %s24_s20 = sshll.u32 %s620_s19, 4  ;;  %s47_s22 = sshll.u32 %s621_s21, 4  ;;  %s25_s20 = int_to_ptr.vmem [resolvable:$true] %s24_s20  ;;  %s48_s22 = int_to_ptr.vmem [resolvable:$true] %s47_s22 }
  0x16   :  { %s499_s25 = scalar_lea.hbm %s760_s0, 64 }
  0x17   :  { %p500_p8 = scmp.ne.s32.totalorder %s760_s0, %s499_s25  ;;  %p503_p9 = scmp.lt.u32.totalorder %s499_s25, %s760_s0 }
  0x19   :  { %p505_p10 = pnand %p503_p9, %p500_p8 }
  0x1b   :  { %508 = shalt.err (!%p505_p10)
}
  0x1c   :  { %s509_s1 = scalar_lea.vmem %s25_s20, 64  ;;  %p514_p12 = scmp.lt.s32.totalorder %s25_s20, %s25_s20 }
  0x1d   :  { %p510_p11 = scmp.ne.s32.totalorder %s25_s20, %s509_s1  ;;  %p515_p13 = scmp.lt.s32.totalorder %s509_s1, %s509_s1 }
  0x1f   :  { %p516_p0 = por %p515_p13, %p514_p12 }
  0x21   :  { %p517_p1 = pnand %p516_p0, %p510_p11 }
  0x23   :  { %520 = shalt.err (!%p517_p1)
}
  0x24   :  { %27 = dma.hbm_to_vmem [thread:$0]  %s760_s0, 64, %s25_s20, [#allocation3]  }
  0x25   :  { %s521_s12 = scalar_lea.hbm %s763_s3, 1024 }
  0x26   :  { %p522_p2 = scmp.ne.s32.totalorder %s763_s3, %s521_s12  ;;  %p525_p3 = scmp.lt.u32.totalorder %s521_s12, %s763_s3 }
  0x28   :  { %p527_p4 = pnand %p525_p3, %p522_p2 }
  0x2a   :  { %530 = shalt.err (!%p527_p4)
}
  0x2b   :  { %s531_s19 = scalar_lea.vmem %s48_s22, 1024  ;;  %p536_p6 = scmp.lt.s32.totalorder %s48_s22, %s48_s22 }
  0x2c   :  { %p532_p5 = scmp.ne.s32.totalorder %s48_s22, %s531_s19  ;;  %p537_p7 = scmp.lt.s32.totalorder %s531_s19, %s531_s19 }
  0x2e   :  { %p538_p8 = por %p537_p7, %p536_p6 }
  0x30   :  { %p539_p9 = pnand %p538_p8, %p532_p5 }
  0x32   :  { %542 = shalt.err (!%p539_p9)
}
  0x33   :  { %53 = dma.hbm_to_vmem [thread:$0]  %s763_s3, 1024, %s48_s22, [#allocation6], %s618_s15, %s618_s15, %s619_s16  }
  0x34   :  { %609 = dma.done.wait [#allocation3], 64  }
  0x35   :  { %610 = vsyncadd [#allocation3], 4294967232 }
  0x36   :  { %611 = dma.done.wait [#allocation6], 2048  }
  0x37   :  { %612 = vsyncadd [#allocation6], 4294965248  ;;  %v622_v0 = vmov 0.0   ;;  %vm623_vm0 = vmmov 0   ;;  %v455_v1 = vld [vmem:[#allocation5] sm:$0xff]   ;;  %v456_v2 = vld [vmem:[#allocation5 + $0x8] sm:$0xff]   ;;  %v294_v27 = vlaneseq }
  0x38   :  { %402 = vmatprep.subr.bf16.mxu0 %v622_v0  ;;  %418 = vmatprep.mubr.msk.bf16.mxu0 %vm623_vm0, %v622_v0  ;;  %v457_v3 = vld [vmem:[#allocation5 + $0x10] sm:$0xff]   ;;  %v463_v4 = vld [vmem:[#allocation7] sm:$0xff]   ;;  %v458_v5 = vld [vmem:[#allocation5 + $0x18] sm:$0xff]   ;;  %v624_v37 = vmov 0   ;;  %s626_s23 = smov [#allocation8]  }
  0x39   :  { %422 = vmatprep.subr.bf16.mxu1 %v622_v0  ;;  %438 = vmatprep.mubr.msk.bf16.mxu1 %vm623_vm0, %v622_v0  ;;  %v464_v6 = vld [vmem:[#allocation7 + $0x8] sm:$0xff]   ;;  %v459_v7 = vld [vmem:[#allocation5 + $0x20] sm:$0xff]   ;;  %v465_v8 = vld [vmem:[#allocation7 + $0x10] sm:$0xff]   ;;  %v295_v28 = vand.u32 127, %v294_v27  ;;  %s329_s24 = sshll.u32 %s626_s23, 4  ;;  %s330_s24 = int_to_ptr.vmem [resolvable:$true] %s329_s24 }
  0x3a   :  { %403 = vmatpush3.bf16.msra.mxu0 %v455_v1  ;;  %423 = vmatpush3.bf16.msra.mxu1 %v463_v4  ;;  %v460_v9 = vld [vmem:[#allocation5 + $0x28] sm:$0xff]   ;;  %v466_v10 = vld [vmem:[#allocation7 + $0x18] sm:$0xff]   ;;  %v461_v11 = vld [vmem:[#allocation5 + $0x30] sm:$0xff]  }
  0x3b   :  { %404 = vmatprep.subr.bf16.mxu0 %v622_v0  ;;  %424 = vmatprep.subr.bf16.mxu1 %v622_v0  ;;  %v467_v12 = vld [vmem:[#allocation7 + $0x20] sm:$0xff]   ;;  %v462_v13 = vld [vmem:[#allocation5 + $0x38] sm:$0xff]   ;;  %v468_v14 = vld [vmem:[#allocation7 + $0x28] sm:$0xff]   ;;  %vm296_vm1 = vcmp.lt.s32.totalorder %v295_v28, 8 }
  0x3c   :  { %v68_v15 = vld [vmem:[#allocation2] sm:$0xf]  ;;  %v469_v16 = vld [vmem:[#allocation7 + $0x30] sm:$0xff]   ;;  %453 = vset.pattern.permute.xlu1 %v624_v37  ;;  %454 = vset.pattern.permute.xlu0 %v624_v37 }
  0x3d   :  { %v470_v17 = vld [vmem:[#allocation7 + $0x38] sm:$0xff]   ;;  %v366_v18 = vld [vmem:[%s762_s2] ss:$0 sm:$0xff] }
  0x3e   :  { %405 = vmatpush3.bf16.msra.mxu0 %v456_v2  ;;  %425 = vmatpush3.bf16.msra.mxu1 %v464_v6  ;;  %v375_v29 = vld [vmem:[%s764_s4] ss:$0 sm:$0xff]  ;;  %s625_s4 = smov [#allocation9]  }
  0x3f   :  { %406 = vmatprep.subr.bf16.mxu0 %v622_v0  ;;  %426 = vmatprep.subr.bf16.mxu1 %v622_v0  ;;  %v312_v36 = vld [vmem:[%s765_s5] sm:$0xff]  ;;  %s339_s5 = sshll.u32 %s625_s4, 4  ;;  %s340_s5 = int_to_ptr.vmem [resolvable:$true] %s339_s5 }
  0x40   :  { %314 = vperm.xlu1 %453, %v312_v36   ;;  %s543_s25 = scalar_lea.vmem %s340_s5, 128  ;;  %p548_p11 = scmp.lt.s32.totalorder %s340_s5, %s340_s5 }
  0x41   :  { %p544_p10 = scmp.ne.s32.totalorder %s340_s5, %s543_s25  ;;  %p549_p12 = scmp.lt.s32.totalorder %s543_s25, %s543_s25 }
  0x42   :  { %407 = vmatpush3.bf16.msra.mxu0 %v457_v3  ;;  %427 = vmatpush3.bf16.msra.mxu1 %v465_v8 }
  0x43   :  { %408 = vmatprep.subr.bf16.mxu0 %v622_v0  ;;  %428 = vmatprep.subr.bf16.mxu1 %v622_v0  ;;  %p550_p13 = por %p549_p12, %p548_p11 }
  0x45   :  { %p551_p0 = pnand %p550_p13, %p544_p10 }
  0x46   :  { %409 = vmatpush3.bf16.msra.mxu0 %v458_v5  ;;  %429 = vmatpush3.bf16.msra.mxu1 %v466_v10 }
  0x47   :  { %410 = vmatprep.subr.bf16.mxu0 %v622_v0  ;;  %430 = vmatprep.subr.bf16.mxu1 %v622_v0 }
  0x4a   :  { %411 = vmatpush3.bf16.msra.mxu0 %v459_v7  ;;  %431 = vmatpush3.bf16.msra.mxu1 %v467_v12 }
  0x4b   :  { %412 = vmatprep.subr.bf16.mxu0 %v622_v0  ;;  %432 = vmatprep.subr.bf16.mxu1 %v622_v0 }
  0x4e   :  { %413 = vmatpush3.bf16.msra.mxu0 %v460_v9  ;;  %433 = vmatpush3.bf16.msra.mxu1 %v468_v14 }
  0x4f   :  { %414 = vmatprep.subr.bf16.mxu0 %v622_v0  ;;  %434 = vmatprep.subr.bf16.mxu1 %v622_v0 }
  0x52   :  { %415 = vmatpush3.bf16.msra.mxu0 %v461_v11  ;;  %435 = vmatpush3.bf16.msra.mxu1 %v469_v16 }
  0x53   :  { %416 = vmatprep.subr.bf16.mxu0 %v622_v0  ;;  %436 = vmatprep.subr.bf16.mxu1 %v622_v0 }
  0x56   :  { %417 = vmatpush3.bf16.msra.mxu0 %v462_v13  ;;  %437 = vmatpush3.bf16.msra.mxu1 %v470_v17 }
  0x59   :  { %419 = vmatmul.mubr.bf16.vlgmr.msra.gmra.mrb[0].mxu0 %v68_v15 }
  0xbf   :  { %v315_v44 = vpop.permute.xlu1 %314 }
  0xc0   :  { %vm316_vm2 = vcmp.eq.s32.totalorder %v295_v28, %v315_v44 }
 0x12c   :  { %v174_v19 = vpop.f32.mrb[0].mxu0 }
 0x12d   :  { %v175_v20 = vadd.f32 %v366_v18, %v174_v19  ;;  %v420_v21 = vpop.f32.mrb[1].mxu0 }
 0x12e   :  { %v177_v22 = vpop.f32.mrb[2].mxu0 }
 0x12f   :  { %v180_v23 = vmul.f32 0.01, %v175_v20  ;;  %v421_v24 = vpop.f32.mrb[3].mxu0 }
 0x131   :  { %v181_v25 = vmax.f32 %v175_v20, %v180_v23 }
 0x133   :  { %v182_v26 = vpack.c.bf16 %v181_v25, %v181_v25 }
 0x135   :  { %439 = vmatmul.mubr.bf16.vlgmr.msra.gmra.mrb[0].mxu1 %v182_v26 }
 0x208   :  { %v288_v30 = vpop.f32.mrb[0].mxu1 }
 0x209   :  { %v289_v31 = vadd.f32 %v375_v29, %v288_v30  ;;  %v440_v32 = vpop.f32.mrb[1].mxu1 }
 0x20a   :  { %v291_v33 = vpop.f32.mrb[2].mxu1 }
 0x20b   :  { %v441_v34 = vpop.f32.mrb[3].mxu1  ;;  %v297_v35 = vsel %vm296_vm1, %v289_v31, -3.4028235e+38 }
 0x20c   :  { %298 = vmax.xlane.f32.xlu0 %v297_v35 }
 0x299   :  { %v299_v38 = vpop.xlane.xlu0 %298 }
 0x29a   :  { %v300_v39 = vsub.f32 %v297_v35, %v299_v38 }
 0x29c   :  { %v301_v40 = vmul.f32 1.442695, %v300_v39 }
 0x29e   :  { %471 = vpow2.f32 %v301_v40 }
 0x2a8   :  { %v472_v41 = vpop.eup %471 }
 0x2a9   :  { %303 = vadd.xlane.f32.xlu0 %v472_v41 }
 0x336   :  { %v304_v42 = vpop.xlane.xlu0 %303 }
 0x337   :  { %473 = vrcp.f32 %v304_v42 }
 0x338   :  { %475 = vlog2.f32 %v304_v42 }
 0x341   :  { %v474_v43 = vpop.eup %473 }
 0x342   :  { %v476_v45 = vpop.eup %475  ;;  %v309_v46 = vmul.f32 %v474_v43, %v472_v41 }
 0x343   :  { %v307_v47 = vmul.f32 0.6931472, %v476_v45 }
 0x344   :  { %310 = vst [vmem:[#allocation8] sm:$0xff] %v309_v46 }
 0x345   :  { %v308_v48 = vsub.f32 %v300_v39, %v307_v47 }
 0x347   :  { %v317_v49 = vsel %vm316_vm2, %v308_v48, 0.0  ;;  %311 = vst [vmem:[#allocation9] sm:$0xff] %v308_v48 }
 0x348   :  { %318 = vadd.xlane.f32.xlu1 %v317_v49 }
 0x349   :  { %554 = shalt.err (!%p551_p0)
}
 0x34a   :  { %s555_s29 = scalar_lea.hbm %s767_s7, 128 }
 0x34b   :  { %p556_p1 = scmp.ne.s32.totalorder %s767_s7, %s555_s29  ;;  %p559_p2 = scmp.lt.u32.totalorder %s555_s29, %s767_s7 }
 0x34d   :  { %p561_p3 = pnand %p559_p2, %p556_p1 }
 0x34f   :  { %564 = shalt.err (!%p561_p3)
}
 0x350   :  { %342 = dma.vmem_to_hbm [thread:$0]  %s340_s5, 128, %s767_s7, [#allocation10]  }
 0x351   :  { %s565_s12 = scalar_lea.vmem %s330_s24, 128  ;;  %p570_p5 = scmp.lt.s32.totalorder %s330_s24, %s330_s24 }
 0x352   :  { %p566_p4 = scmp.ne.s32.totalorder %s330_s24, %s565_s12  ;;  %p571_p6 = scmp.lt.s32.totalorder %s565_s12, %s565_s12 }
 0x354   :  { %p572_p7 = por %p571_p6, %p570_p5 }
 0x356   :  { %p573_p8 = pnand %p572_p7, %p566_p4 }
 0x358   :  { %576 = shalt.err (!%p573_p8)
}
 0x359   :  { %s577_s17 = scalar_lea.hbm %s766_s6, 128 }
 0x35a   :  { %p578_p9 = scmp.ne.s32.totalorder %s766_s6, %s577_s17  ;;  %p581_p10 = scmp.lt.u32.totalorder %s577_s17, %s766_s6 }
 0x35c   :  { %p583_p11 = pnand %p581_p10, %p578_p9 }
 0x35e   :  { %586 = shalt.err (!%p583_p11)
}
 0x35f   :  { %332 = dma.vmem_to_hbm [thread:$0]  %s330_s24, 128, %s766_s6, [#allocation4]   ;;  %vm321_vm3 = vcmask 64512  }
 0x360   :  { %s627_s15 = smov [#allocation11]  }
 0x361   :  { %s349_s16 = sshll.u32 %s627_s15, 4  ;;  %s350_s16 = int_to_ptr.vmem [resolvable:$true] %s349_s16 }
 0x362   :  { %s587_s21 = scalar_lea.vmem %s350_s16, 128  ;;  %p592_p13 = scmp.lt.s32.totalorder %s350_s16, %s350_s16 }
 0x363   :  { %p588_p12 = scmp.ne.s32.totalorder %s350_s16, %s587_s21  ;;  %p593_p0 = scmp.lt.s32.totalorder %s587_s21, %s587_s21 }
 0x365   :  { %p594_p1 = por %p593_p0, %p592_p13 }
 0x367   :  { %p595_p2 = pnand %p594_p1, %p588_p12 }
 0x3d5   :  { %v319_v50 = vpop.xlane.xlu1 %318 }
 0x3d6   :  { %v320_v51 = vsub.f32 0.0, %v319_v50 }
 0x3d8   :  { %322 = vst.msk [vmem:[#allocation11] sm:$0xff] %vm321_vm3, %v320_v51 }
 0x3d9   :  { %598 = shalt.err (!%p595_p2)
}
 0x3da   :  { %s599_s4 = scalar_lea.hbm %s768_s8, 128 }
 0x3db   :  { %p600_p3 = scmp.ne.s32.totalorder %s768_s8, %s599_s4  ;;  %p603_p4 = scmp.lt.u32.totalorder %s599_s4, %s768_s8 }
 0x3dd   :  { %p605_p5 = pnand %p603_p4, %p600_p3 }
 0x3df   :  { %608 = shalt.err (!%p605_p5)
}
 0x3e0   :  { %352 = dma.vmem_to_hbm [thread:$0]  %s350_s16, 128, %s768_s8, [#allocation10]  }
 0x3e1   :  { %613 = dma.done.wait [#allocation4], 128  }
 0x3e2   :  { %614 = vsyncadd [#allocation4], 4294967168 }
 0x3e3   :  { %615 = dma.done.wait [#allocation10], 256  }
 0x3e4   :  { %616 = vsyncadd [#allocation10], 4294967040 }
 0x3e5   :  { %362 = vsyncpa [#allocation3], 1 }
 0x3e6   :  { %363 = vsyncpa [#allocation6], 1 }
 0x3e7   :  { %364 = vsyncpa [#allocation4], 1 }
 0x3e8   :  { %365 = vsyncpa [#allocation10], 1 }

// kernel: tpu_custom_call.1
= control target key start
LH: loop header
LB: loop body
LE: loop exit
PB: predicated region body
PF: predicated region fallthrough
CT: control target
= control target key end

     0   :  { %14 = vsyncpa [#allocation3], 0  ;;  %s760_s0 = inlined_call_operand.hbm [shape: bf16[8,128], index: 0, kind: input, shape index: {}]   ;;  %s761_s1 = inlined_call_operand.hbm [shape: bf16[128,128], index: 1, kind: input, shape index: {}]   ;;  %s762_s2 = inlined_call_operand.vmem [shape: f32[1,128], index: 2, kind: input, shape index: {}]   ;;  %s763_s3 = inlined_call_operand.hbm [shape: bf16[128,128], index: 3, kind: input, shape index: {}]   ;;  %s764_s4 = inlined_call_operand.vmem [shape: f32[1,128], index: 4, kind: input, shape index: {}]   ;;  %s765_s5 = inlined_call_operand.vmem [shape: s32[8,8], index: 5, kind: input, shape index: {}]   ;;  %s766_s6 = inlined_call_operand.hbm [shape: f32[8,128], index: 6, kind: output, shape index: {0}]   ;;  %s767_s7 = inlined_call_operand.hbm [shape: f32[8,128], index: 7, kind: output, shape index: {1}]   ;;  %s768_s8 = inlined_call_operand.hbm [shape: f32[8,8], index: 8, kind: output, shape index: {2}]  }
   0x1   :  { %15 = vsyncpa [#allocation6], 0 }
   0x2   :  { %16 = vsyncpa [#allocation4], 0 }
   0x3   :  { %17 = vsyncpa [#allocation10], 0  ;;  %s617_s27 = smov [#allocation5]   ;;  %s477_s9 = scalar_lea.hbm %s761_s1, 1024 }
   0x4   :  { %s33_s28 = sshll.u32 %s617_s27, 4  ;;  %p478_p0 = scmp.ne.s32.totalorder %s761_s1, %s477_s9  ;;  %s34_s28 = int_to_ptr.vmem [resolvable:$true] %s33_s28 }
   0x5   :  { %p481_p1 = scmp.lt.u32.totalorder %s477_s9, %s761_s1 }
   0x7   :  { %p483_p2 = pnand %p481_p1, %p478_p0 }
   0x9   :  { %486 = shalt.err (!%p483_p2)
}
   0xa   :  { %s487_s14 = scalar_lea.vmem %s34_s28, 1024  ;;  %p492_p4 = scmp.lt.s32.totalorder %s34_s28, %s34_s28 }
   0xb   :  { %p488_p3 = scmp.ne.s32.totalorder %s34_s28, %s487_s14  ;;  %p493_p5 = scmp.lt.s32.totalorder %s487_s14, %s487_s14 }
   0xd   :  { %p494_p6 = por %p493_p5, %p492_p4 }
   0xf   :  { %p495_p7 = pnand %p494_p6, %p488_p3 }
  0x11   :  { %498 = shalt.err (!%p495_p7)
}
  0x12   :  { %s618_s15 = smov 64   ;;  %s619_s16 = smov 4  }
  0x13   :  { %39 = dma.hbm_to_vmem [thread:$0]  %s761_s1, 1024, %s34_s28, [#allocation6], %s618_s15, %s618_s15, %s619_s16  }
  0x14   :  { %s620_s19 = smov [#allocation2]   ;;  %s621_s21 = smov [#allocation7]  }
  0x15   :  { %s24_s20 = sshll.u32 %s620_s19, 4  ;;  %s47_s22 = sshll.u32 %s621_s21, 4  ;;  %s25_s20 = int_to_ptr.vmem [resolvable:$true] %s24_s20  ;;  %s48_s22 = int_to_ptr.vmem [resolvable:$true] %s47_s22 }
  0x16   :  { %s499_s25 = scalar_lea.hbm %s760_s0, 64 }
  0x17   :  { %p500_p8 = scmp.ne.s32.totalorder %s760_s0, %s499_s25  ;;  %p503_p9 = scmp.lt.u32.totalorder %s499_s25, %s760_s0 }
  0x19   :  { %p505_p10 = pnand %p503_p9, %p500_p8 }
  0x1b   :  { %508 = shalt.err (!%p505_p10)
}
  0x1c   :  { %s509_s1 = scalar_lea.vmem %s25_s20, 64  ;;  %p514_p12 = scmp.lt.s32.totalorder %s25_s20, %s25_s20 }
  0x1d   :  { %p510_p11 = scmp.ne.s32.totalorder %s25_s20, %s509_s1  ;;  %p515_p13 = scmp.lt.s32.totalorder %s509_s1, %s509_s1 }
  0x1f   :  { %p516_p0 = por %p515_p13, %p514_p12 }
  0x21   :  { %p517_p1 = pnand %p516_p0, %p510_p11 }
  0x23   :  { %520 = shalt.err (!%p517_p1)
}
  0x24   :  { %27 = dma.hbm_to_vmem [thread:$0]  %s760_s0, 64, %s25_s20, [#allocation3]  }
  0x25   :  { %s521_s12 = scalar_lea.hbm %s763_s3, 1024 }
  0x26   :  { %p522_p2 = scmp.ne.s32.totalorder %s763_s3, %s521_s12  ;;  %p525_p3 = scmp.lt.u32.totalorder %s521_s12, %s763_s3 }
  0x28   :  { %p527_p4 = pnand %p525_p3, %p522_p2 }
  0x2a   :  { %530 = shalt.err (!%p527_p4)
}
  0x2b   :  { %s531_s19 = scalar_lea.vmem %s48_s22, 1024  ;;  %p536_p6 = scmp.lt.s32.totalorder %s48_s22, %s48_s22 }
  0x2c   :  { %p532_p5 = scmp.ne.s32.totalorder %s48_s22, %s531_s19  ;;  %p537_p7 = scmp.lt.s32.totalorder %s531_s19, %s531_s19 }
  0x2e   :  { %p538_p8 = por %p537_p7, %p536_p6 }
  0x30   :  { %p539_p9 = pnand %p538_p8, %p532_p5 }
  0x32   :  { %542 = shalt.err (!%p539_p9)
}
  0x33   :  { %53 = dma.hbm_to_vmem [thread:$0]  %s763_s3, 1024, %s48_s22, [#allocation6], %s618_s15, %s618_s15, %s619_s16  }
  0x34   :  { %609 = dma.done.wait [#allocation3], 64  }
  0x35   :  { %610 = vsyncadd [#allocation3], 4294967232 }
  0x36   :  { %611 = dma.done.wait [#allocation6], 2048  }
  0x37   :  { %612 = vsyncadd [#allocation6], 4294965248  ;;  %v622_v0 = vmov 0.0   ;;  %vm623_vm0 = vmmov 0   ;;  %v455_v1 = vld [vmem:[#allocation5] sm:$0xff]   ;;  %v456_v2 = vld [vmem:[#allocation5 + $0x8] sm:$0xff]   ;;  %v294_v27 = vlaneseq }
  0x38   :  { %402 = vmatprep.subr.bf16.mxu0 %v622_v0  ;;  %418 = vmatprep.mubr.msk.bf16.mxu0 %vm623_vm0, %v622_v0  ;;  %v457_v3 = vld [vmem:[#allocation5 + $0x10] sm:$0xff]   ;;  %v463_v4 = vld [vmem:[#allocation7] sm:$0xff]   ;;  %v458_v5 = vld [vmem:[#allocation5 + $0x18] sm:$0xff]   ;;  %v624_v37 = vmov 0   ;;  %s626_s23 = smov [#allocation8]  }
  0x39   :  { %422 = vmatprep.subr.bf16.mxu1 %v622_v0  ;;  %438 = vmatprep.mubr.msk.bf16.mxu1 %vm623_vm0, %v622_v0  ;;  %v464_v6 = vld [vmem:[#allocation7 + $0x8] sm:$0xff]   ;;  %v459_v7 = vld [vmem:[#allocation5 + $0x20] sm:$0xff]   ;;  %v465_v8 = vld [vmem:[#allocation7 + $0x10] sm:$0xff]   ;;  %v295_v28 = vand.u32 127, %v294_v27  ;;  %s329_s24 = sshll.u32 %s626_s23, 4  ;;  %s330_s24 = int_to_ptr.vmem [resolvable:$true] %s329_s24 }
  0x3a   :  { %403 = vmatpush3.bf16.msra.mxu0 %v455_v1  ;;  %423 = vmatpush3.bf16.msra.mxu1 %v463_v4  ;;  %v460_v9 = vld [vmem:[#allocation5 + $0x28] sm:$0xff]   ;;  %v466_v10 = vld [vmem:[#allocation7 + $0x18] sm:$0xff]   ;;  %v461_v11 = vld [vmem:[#allocation5 + $0x30] sm:$0xff]  }
  0x3b   :  { %404 = vmatprep.subr.bf16.mxu0 %v622_v0  ;;  %424 = vmatprep.subr.bf16.mxu1 %v622_v0  ;;  %v467_v12 = vld [vmem:[#allocation7 + $0x20] sm:$0xff]   ;;  %v462_v13 = vld [vmem:[#allocation5 + $0x38] sm:$0xff]   ;;  %v468_v14 = vld [vmem:[#allocation7 + $0x28] sm:$0xff]   ;;  %vm296_vm1 = vcmp.lt.s32.totalorder %v295_v28, 8 }
  0x3c   :  { %v68_v15 = vld [vmem:[#allocation2] sm:$0xf]  ;;  %v469_v16 = vld [vmem:[#allocation7 + $0x30] sm:$0xff]   ;;  %453 = vset.pattern.permute.xlu1 %v624_v37  ;;  %454 = vset.pattern.permute.xlu0 %v624_v37 }
  0x3d   :  { %v470_v17 = vld [vmem:[#allocation7 + $0x38] sm:$0xff]   ;;  %v366_v18 = vld [vmem:[%s762_s2] ss:$0 sm:$0xff] }
  0x3e   :  { %405 = vmatpush3.bf16.msra.mxu0 %v456_v2  ;;  %425 = vmatpush3.bf16.msra.mxu1 %v464_v6  ;;  %v375_v29 = vld [vmem:[%s764_s4] ss:$0 sm:$0xff]  ;;  %s625_s4 = smov [#allocation9]  }
  0x3f   :  { %406 = vmatprep.subr.bf16.mxu0 %v622_v0  ;;  %426 = vmatprep.subr.bf16.mxu1 %v622_v0  ;;  %v312_v36 = vld [vmem:[%s765_s5] sm:$0xff]  ;;  %s339_s5 = sshll.u32 %s625_s4, 4  ;;  %s340_s5 = int_to_ptr.vmem [resolvable:$true] %s339_s5 }
  0x40   :  { %314 = vperm.xlu1 %453, %v312_v36   ;;  %s543_s25 = scalar_lea.vmem %s340_s5, 128  ;;  %p548_p11 = scmp.lt.s32.totalorder %s340_s5, %s340_s5 }
  0x41   :  { %p544_p10 = scmp.ne.s32.totalorder %s340_s5, %s543_s25  ;;  %p549_p12 = scmp.lt.s32.totalorder %s543_s25, %s543_s25 }
  0x42   :  { %407 = vmatpush3.bf16.msra.mxu0 %v457_v3  ;;  %427 = vmatpush3.bf16.msra.mxu1 %v465_v8 }
  0x43   :  { %408 = vmatprep.subr.bf16.mxu0 %v622_v0  ;;  %428 = vmatprep.subr.bf16.mxu1 %v622_v0  ;;  %p550_p13 = por %p549_p12, %p548_p11 }
  0x45   :  { %p551_p0 = pnand %p550_p13, %p544_p10 }
  0x46   :  { %409 = vmatpush3.bf16.msra.mxu0 %v458_v5  ;;  %429 = vmatpush3.bf16.msra.mxu1 %v466_v10 }
  0x47   :  { %410 = vmatprep.subr.bf16.mxu0 %v622_v0  ;;  %430 = vmatprep.subr.bf16.mxu1 %v622_v0 }
  0x4a   :  { %411 = vmatpush3.bf16.msra.mxu0 %v459_v7  ;;  %431 = vmatpush3.bf16.msra.mxu1 %v467_v12 }
  0x4b   :  { %412 = vmatprep.subr.bf16.mxu0 %v622_v0  ;;  %432 = vmatprep.subr.bf16.mxu1 %v622_v0 }
  0x4e   :  { %413 = vmatpush3.bf16.msra.mxu0 %v460_v9  ;;  %433 = vmatpush3.bf16.msra.mxu1 %v468_v14 }
  0x4f   :  { %414 = vmatprep.subr.bf16.mxu0 %v622_v0  ;;  %434 = vmatprep.subr.bf16.mxu1 %v622_v0 }
  0x52   :  { %415 = vmatpush3.bf16.msra.mxu0 %v461_v11  ;;  %435 = vmatpush3.bf16.msra.mxu1 %v469_v16 }
  0x53   :  { %416 = vmatprep.subr.bf16.mxu0 %v622_v0  ;;  %436 = vmatprep.subr.bf16.mxu1 %v622_v0 }
  0x56   :  { %417 = vmatpush3.bf16.msra.mxu0 %v462_v13  ;;  %437 = vmatpush3.bf16.msra.mxu1 %v470_v17 }
  0x59   :  { %419 = vmatmul.mubr.bf16.vlgmr.msra.gmra.mrb[0].mxu0 %v68_v15 }
  0xbf   :  { %v315_v44 = vpop.permute.xlu1 %314 }
  0xc0   :  { %vm316_vm2 = vcmp.eq.s32.totalorder %v295_v28, %v315_v44 }
 0x12c   :  { %v174_v19 = vpop.f32.mrb[0].mxu0 }
 0x12d   :  { %v175_v20 = vadd.f32 %v366_v18, %v174_v19  ;;  %v420_v21 = vpop.f32.mrb[1].mxu0 }
 0x12e   :  { %v177_v22 = vpop.f32.mrb[2].mxu0 }
 0x12f   :  { %v180_v23 = vmul.f32 0.01, %v175_v20  ;;  %v421_v24 = vpop.f32.mrb[3].mxu0 }
 0x131   :  { %v181_v25 = vmax.f32 %v175_v20, %v180_v23 }
 0x133   :  { %v182_v26 = vpack.c.bf16 %v181_v25, %v181_v25 }
 0x135   :  { %439 = vmatmul.mubr.bf16.vlgmr.msra.gmra.mrb[0].mxu1 %v182_v26 }
 0x208   :  { %v288_v30 = vpop.f32.mrb[0].mxu1 }
 0x209   :  { %v289_v31 = vadd.f32 %v375_v29, %v288_v30  ;;  %v440_v32 = vpop.f32.mrb[1].mxu1 }
 0x20a   :  { %v291_v33 = vpop.f32.mrb[2].mxu1 }
 0x20b   :  { %v441_v34 = vpop.f32.mrb[3].mxu1  ;;  %v297_v35 = vsel %vm296_vm1, %v289_v31, -3.4028235e+38 }
 0x20c   :  { %298 = vmax.xlane.f32.xlu0 %v297_v35 }
 0x299   :  { %v299_v38 = vpop.xlane.xlu0 %298 }
 0x29a   :  { %v300_v39 = vsub.f32 %v297_v35, %v299_v38 }
 0x29c   :  { %v301_v40 = vmul.f32 1.442695, %v300_v39 }
 0x29e   :  { %471 = vpow2.f32 %v301_v40 }
 0x2a8   :  { %v472_v41 = vpop.eup %471 }
 0x2a9   :  { %303 = vadd.xlane.f32.xlu0 %v472_v41 }
 0x336   :  { %v304_v42 = vpop.xlane.xlu0 %303 }
 0x337   :  { %473 = vrcp.f32 %v304_v42 }
 0x338   :  { %475 = vlog2.f32 %v304_v42 }
 0x341   :  { %v474_v43 = vpop.eup %473 }
 0x342   :  { %v476_v45 = vpop.eup %475  ;;  %v309_v46 = vmul.f32 %v474_v43, %v472_v41 }
 0x343   :  { %v307_v47 = vmul.f32 0.6931472, %v476_v45 }
 0x344   :  { %310 = vst [vmem:[#allocation8] sm:$0xff] %v309_v46 }
 0x345   :  { %v308_v48 = vsub.f32 %v300_v39, %v307_v47 }
 0x347   :  { %v317_v49 = vsel %vm316_vm2, %v308_v48, 0.0  ;;  %311 = vst [vmem:[#allocation9] sm:$0xff] %v308_v48 }
 0x348   :  { %318 = vadd.xlane.f32.xlu1 %v317_v49 }
 0x349   :  { %554 = shalt.err (!%p551_p0)
}
 0x34a   :  { %s555_s29 = scalar_lea.hbm %s767_s7, 128 }
 0x34b   :  { %p556_p1 = scmp.ne.s32.totalorder %s767_s7, %s555_s29  ;;  %p559_p2 = scmp.lt.u32.totalorder %s555_s29, %s767_s7 }
 0x34d   :  { %p561_p3 = pnand %p559_p2, %p556_p1 }
 0x34f   :  { %564 = shalt.err (!%p561_p3)
}
 0x350   :  { %342 = dma.vmem_to_hbm [thread:$0]  %s340_s5, 128, %s767_s7, [#allocation10]  }
 0x351   :  { %s565_s12 = scalar_lea.vmem %s330_s24, 128  ;;  %p570_p5 = scmp.lt.s32.totalorder %s330_s24, %s330_s24 }
 0x352   :  { %p566_p4 = scmp.ne.s32.totalorder %s330_s24, %s565_s12  ;;  %p571_p6 = scmp.lt.s32.totalorder %s565_s12, %s565_s12 }
 0x354   :  { %p572_p7 = por %p571_p6, %p570_p5 }
 0x356   :  { %p573_p8 = pnand %p572_p7, %p566_p4 }
 0x358   :  { %576 = shalt.err (!%p573_p8)
}
 0x359   :  { %s577_s17 = scalar_lea.hbm %s766_s6, 128 }
 0x35a   :  { %p578_p9 = scmp.ne.s32.totalorder %s766_s6, %s577_s17  ;;  %p581_p10 = scmp.lt.u32.totalorder %s577_s17, %s766_s6 }
 0x35c   :  { %p583_p11 = pnand %p581_p10, %p578_p9 }
 0x35e   :  { %586 = shalt.err (!%p583_p11)
}
 0x35f   :  { %332 = dma.vmem_to_hbm [thread:$0]  %s330_s24, 128, %s766_s6, [#allocation4]   ;;  %vm321_vm3 = vcmask 64512  }
 0x360   :  { %s627_s15 = smov [#allocation11]  }
 0x361   :  { %s349_s16 = sshll.u32 %s627_s15, 4  ;;  %s350_s16 = int_to_ptr.vmem [resolvable:$true] %s349_s16 }
 0x362   :  { %s587_s21 = scalar_lea.vmem %s350_s16, 128  ;;  %p592_p13 = scmp.lt.s32.totalorder %s350_s16, %s350_s16 }
 0x363   :  { %p588_p12 = scmp.ne.s32.totalorder %s350_s16, %s587_s21  ;;  %p593_p0 = scmp.lt.s32.totalorder %s587_s21, %s587_s21 }
 0x365   :  { %p594_p1 = por %p593_p0, %p592_p13 }
 0x367   :  { %p595_p2 = pnand %p594_p1, %p588_p12 }
 0x3d5   :  { %v319_v50 = vpop.xlane.xlu1 %318 }
 0x3d6   :  { %v320_v51 = vsub.f32 0.0, %v319_v50 }
 0x3d8   :  { %322 = vst.msk [vmem:[#allocation11] sm:$0xff] %vm321_vm3, %v320_v51 }
 0x3d9   :  { %598 = shalt.err (!%p595_p2)
}
 0x3da   :  { %s599_s4 = scalar_lea.hbm %s768_s8, 128 }
 0x3db   :  { %p600_p3 = scmp.ne.s32.totalorder %s768_s8, %s599_s4  ;;  %p603_p4 = scmp.lt.u32.totalorder %s599_s4, %s768_s8 }
 0x3dd   :  { %p605_p5 = pnand %p603_p4, %p600_p3 }
 0x3df   :  { %608 = shalt.err (!%p605_p5)
}
 0x3e0   :  { %352 = dma.vmem_to_hbm [thread:$0]  %s350_s16, 128, %s768_s8, [#allocation10]  }
 0x3e1   :  { %613 = dma.done.wait [#allocation4], 128  }
 0x3e2   :  { %614 = vsyncadd [#allocation4], 4294967168 }
 0x3e3   :  { %615 = dma.done.wait [#allocation10], 256  }
 0x3e4   :  { %616 = vsyncadd [#allocation10], 4294967040 }
 0x3e5   :  { %362 = vsyncpa [#allocation3], 1 }
 0x3e6   :  { %363 = vsyncpa [#allocation6], 1 }
 0x3e7   :  { %364 = vsyncpa [#allocation4], 1 }
 0x3e8   :  { %365 = vsyncpa [#allocation10], 1 }

</bundles_post_ra>
